<compile_context>
chip_gen: v6e
topology: v6e:2x2x1
jax: 0.10.0
libtpu: 0.0.40
codegen_flags: <defaults>
</compile_context>

<pallas_src>
import jax
import jax.numpy as jnp
from jax.experimental import pallas as pl
from jax.experimental.pallas import tpu as pltpu

_TM_MAX, _TK_MAX, _TN_MAX = 256, 512, 512
_BN_EPS = 1e-5


def _round_up(v: int, m: int) -> int:
    return ((v + m - 1) // m) * m


def _mish_f32(z):
    """mish(z) = z * tanh(softplus(z)), single EUP transcendental, overflow-free."""
    e = jnp.exp(-jnp.abs(z))
    e2 = e * e
    pos = z >= 0.0
    # tanh(softplus(z)) = num / den with e = exp(-|z|):
    #   z >= 0: (1 + 2e) / (1 + 2e + 2e^2)
    #   z <  0: (2e + e^2) / (2 + 2e + e^2)
    num = jnp.where(pos, 1.0 + 2.0 * e, 2.0 * e + e2)
    den = num + jnp.where(pos, 2.0 * e2, 2.0)      # share num inside den
    return z * (num / den)


def _linear_mish_bn_kernel(x_ref, w_ref, b_ref, sc_ref, sh_ref,
                           state_ref, feat_ref, acc_ref):
    @pl.when(pl.program_id(2) == 0)
    def _():
        acc_ref[...] = jnp.zeros_like(acc_ref)

    acc_ref[...] += jnp.dot(x_ref[...], w_ref[...],
                            preferred_element_type=jnp.float32)

    @pl.when(pl.program_id(2) == pl.num_programs(2) - 1)
    def _():
        z = acc_ref[...] + b_ref[...].astype(jnp.float32)
        s = _mish_f32(z)
        state_ref[...] = s.astype(state_ref.dtype)
        feat_ref[...] = (s * sc_ref[...].astype(jnp.float32)
                         + sh_ref[...].astype(jnp.float32)).astype(feat_ref.dtype)


def _linear_sigmoid_kernel(x_ref, w_ref, b_ref, o_ref, acc_ref):
    @pl.when(pl.program_id(2) == 0)
    def _():
        acc_ref[...] = jnp.zeros_like(acc_ref)

    acc_ref[...] += jnp.dot(x_ref[...], w_ref[...],
                            preferred_element_type=jnp.float32)

    @pl.when(pl.program_id(2) == pl.num_programs(2) - 1)
    def _():
        z = acc_ref[...] + b_ref[...].astype(jnp.float32)
        o_ref[...] = (1.0 / (1.0 + jnp.exp(-z))).astype(o_ref.dtype)


def _padded_operands(x, w, row_vecs):
    """Pad (x, w, per-output-feature row vectors) to exact tile multiples."""
    M, K = x.shape
    K2, N = w.shape
    assert K == K2, (x.shape, w.shape)
    tm = min(_round_up(M, 8), _TM_MAX)
    tk = min(_round_up(K, 128), _TK_MAX)
    tn = min(_round_up(N, 128), _TN_MAX)
    Mp, Kp, Np = _round_up(M, tm), _round_up(K, tk), _round_up(N, tn)
    xp = jnp.pad(x, ((0, Mp - M), (0, Kp - K)))
    wp = jnp.pad(w, ((0, Kp - K), (0, Np - N)))
    rows = [jnp.pad(r.reshape(1, -1), ((0, 0), (0, Np - N))) for r in row_vecs]
    return xp, wp, rows, (tm, tk, tn), (Mp, Kp, Np)


def linear_mish_bn(x, w, b, bn_scale, bn_shift):
    """(state, feat) = (mish(x @ w + b), mish(x @ w + b) * bn_scale + bn_shift)."""
    M, _ = x.shape
    N = w.shape[1]
    xp, wp, rows, (tm, tk, tn), (Mp, Kp, Np) = _padded_operands(
        x, w, (b, bn_scale, bn_shift))
    bp, scp, shp = rows
    grid = (Mp // tm, Np // tn, Kp // tk)
    row_spec = pl.BlockSpec((1, tn), lambda i, j, k: (0, j))
    out_spec = pl.BlockSpec((tm, tn), lambda i, j, k: (i, j))

    state, feat = pl.pallas_call(
        _linear_mish_bn_kernel,
        out_shape=(jax.ShapeDtypeStruct((Mp, Np), x.dtype),
                   jax.ShapeDtypeStruct((Mp, Np), x.dtype)),
        grid_spec=pltpu.PrefetchScalarGridSpec(
            num_scalar_prefetch=0,
            grid=grid,
            in_specs=[pl.BlockSpec((tm, tk), lambda i, j, k: (i, k)),
                      pl.BlockSpec((tk, tn), lambda i, j, k: (k, j)),
                      row_spec, row_spec, row_spec],
            out_specs=[out_spec, out_spec],
            scratch_shapes=[pltpu.VMEM((tm, tn), jnp.float32)]),
        compiler_params=pltpu.CompilerParams(
            dimension_semantics=("parallel", "parallel", "arbitrary")),
    )(xp, wp, bp, scp, shp)
    return state[:M, :N], feat[:M, :N]


def linear_sigmoid(x, w, b):
    """sigmoid(x @ w + b) with the sigmoid fused into the matmul epilogue."""
    M, _ = x.shape
    N = w.shape[1]
    xp, wp, rows, (tm, tk, tn), (Mp, Kp, Np) = _padded_operands(x, w, (b,))
    bp = rows[0]
    grid = (Mp // tm, Np // tn, Kp // tk)

    out = pl.pallas_call(
        _linear_sigmoid_kernel,
        out_shape=jax.ShapeDtypeStruct((Mp, Np), x.dtype),
        grid_spec=pltpu.PrefetchScalarGridSpec(
            num_scalar_prefetch=0,
            grid=grid,
            in_specs=[pl.BlockSpec((tm, tk), lambda i, j, k: (i, k)),
                      pl.BlockSpec((tk, tn), lambda i, j, k: (k, j)),
                      pl.BlockSpec((1, tn), lambda i, j, k: (0, j))],
            out_specs=pl.BlockSpec((tm, tn), lambda i, j, k: (i, j)),
            scratch_shapes=[pltpu.VMEM((tm, tn), jnp.float32)]),
        compiler_params=pltpu.CompilerParams(
            dimension_semantics=("parallel", "parallel", "arbitrary")),
    )(xp, wp, bp)
    return out[:M, :N]


def init_fullynet_params(key, input_dim, hidden_dims, output_dim):
    """Small FullyNet-style layer stack: Linear->Mish->BN->Linear->Sigmoid per layer."""
    params = []
    in_dim = input_dim
    for h in hidden_dims:
        key, k1, k2, k3, k4, k5, k6, k7, k8 = jax.random.split(key, 9)
        params.append(dict(
            W=jax.random.normal(k1, (in_dim, h), jnp.float32) / jnp.sqrt(float(in_dim)),
            b=0.01 * jax.random.normal(k2, (h,), jnp.float32),
            gamma=1.0 + 0.1 * jax.random.normal(k3, (h,), jnp.float32),
            beta=0.1 * jax.random.normal(k4, (h,), jnp.float32),
            r_mean=0.1 * jax.random.normal(k5, (h,), jnp.float32),
            r_var=0.5 + jax.random.uniform(k6, (h,), jnp.float32),
            Wo=jax.random.normal(k7, (h, output_dim), jnp.float32) / jnp.sqrt(float(h)),
            bo=0.01 * jax.random.normal(k8, (output_dim,), jnp.float32),
        ))
        in_dim = h
    return params


def fullynet_forward(x, params):
    """Pallas forward: returns (pred list, state list) like FullyNet.forward."""
    preds, states = [], []
    feat = x                      # concatenated input features (batch, input_dim)
    for p in params:
        scale = p["gamma"] / jnp.sqrt(p["r_var"] + _BN_EPS)
        shift = p["beta"] - p["r_mean"] * scale
        state, feat = linear_mish_bn(feat, p["W"], p["b"], scale, shift)
        pred = linear_sigmoid(feat, p["Wo"], p["bo"])
        states.append(state)
        preds.append(pred)
    return preds, states


def _ref_forward(x, params):
    """Pure-JAX reference (high-precision matmuls)."""
    hp = jax.lax.Precision.HIGHEST
    preds, states = [], []
    feat = x
    for p in params:
        z = jnp.dot(feat, p["W"], precision=hp) + p["b"]
        s = z * jnp.tanh(jax.nn.softplus(z))           # Mish
        states.append(s)
        feat = (s - p["r_mean"]) / jnp.sqrt(p["r_var"] + _BN_EPS) * p["gamma"] + p["beta"]
        preds.append(jax.nn.sigmoid(jnp.dot(feat, p["Wo"], precision=hp) + p["bo"]))
    return preds, states


if __name__ == "__main__":
    key = jax.random.PRNGKey(0)
    k_params, k_x = jax.random.split(key)

    batch, input_dim, output_dim = 4, 30, 2
    hidden_dims = (40, 37, 52)          # ragged sizes exercise the padding path

    params = init_fullynet_params(k_params, input_dim, hidden_dims, output_dim)
    # Equivalent to torch.cat(features, axis=1) of input_dim (batch, 1) tensors.
    x = jax.random.normal(k_x, (batch, input_dim), dtype=jnp.float32)

    preds, states = fullynet_forward(x, params)
    jax.block_until_ready(preds[-1])

    ref_preds, ref_states = _ref_forward(x, params)
    for got, want in zip(preds, ref_preds):
        assert got.shape == want.shape and got.dtype == want.dtype
        assert jnp.allclose(got, want, atol=1e-3, rtol=1e-3)
    for got, want in zip(states, ref_states):
        assert got.shape == want.shape and got.dtype == want.dtype
        assert jnp.allclose(got, want, atol=1e-3, rtol=1e-3)

    print("KERNEL_OK")
</pallas_src>

<mosaic_0001>
module attributes {stable_mosaic.version = 11 : i64} {
  func.func @_linear_mish_bn_kernel(%arg0: i32, %arg1: i32, %arg2: i32, %arg3: memref<8x128xf32, #tpu.memory_space<vmem>>, %arg4: memref<128x128xf32, #tpu.memory_space<vmem>>, %arg5: memref<1x128xf32, #tpu.memory_space<vmem>>, %arg6: memref<1x128xf32, #tpu.memory_space<vmem>>, %arg7: memref<1x128xf32, #tpu.memory_space<vmem>>, %arg8: memref<8x128xf32, #tpu.memory_space<vmem>>, %arg9: memref<8x128xf32, #tpu.memory_space<vmem>>, %arg10: memref<8x128xf32, #tpu.memory_space<vmem>>) attributes {dimension_semantics = [#tpu.dimension_semantics<parallel>, #tpu.dimension_semantics<parallel>, #tpu.dimension_semantics<arbitrary>], iteration_bounds = array<i64: 1, 1, 1>, scalar_prefetch = 0 : i64, scratch_operands = 1 : i64, tpu.core_type = #tpu.core_type<tc>, window_params = [{transform_indices = @transform_0, window_bounds = array<i64: 8, 128>}, {transform_indices = @transform_1, window_bounds = array<i64: 128, 128>}, {transform_indices = @transform_2, window_bounds = array<i64: 1, 128>}, {transform_indices = @transform_3, window_bounds = array<i64: 1, 128>}, {transform_indices = @transform_4, window_bounds = array<i64: 1, 128>}, {transform_indices = @transform_5, window_bounds = array<i64: 8, 128>}, {transform_indices = @transform_6, window_bounds = array<i64: 8, 128>}]} {
    %c0_i32 = arith.constant 0 : i32
    %0 = arith.cmpi eq, %arg2, %c0_i32 : i32
    %1 = arith.extui %0 : i1 to i32
    %c0_i32_0 = arith.constant 0 : i32
    %2 = arith.cmpi ne, %1, %c0_i32_0 : i32
    scf.if %2 {
      %cst_10 = arith.constant 0.000000e+00 : f32
      %12 = vector.broadcast %cst_10 : f32 to vector<8x128xf32>
      %c0_11 = arith.constant 0 : index
      %c0_12 = arith.constant 0 : index
      %13 = vector.load %arg10[%c0_11, %c0_12] : memref<8x128xf32, #tpu.memory_space<vmem>>, vector<8x128xf32>
      tpu.vector_store %arg10[%c0_11, %c0_12], %12 {strides = array<i32>} : memref<8x128xf32, #tpu.memory_space<vmem>>, vector<8x128xf32>,
    } else {
    }
    %c0 = arith.constant 0 : index
    %c0_1 = arith.constant 0 : index
    %3 = vector.load %arg10[%c0, %c0_1] : memref<8x128xf32, #tpu.memory_space<vmem>>, vector<8x128xf32>
    %c0_2 = arith.constant 0 : index
    %c0_3 = arith.constant 0 : index
    %4 = vector.load %arg3[%c0_2, %c0_3] : memref<8x128xf32, #tpu.memory_space<vmem>>, vector<8x128xf32>
    %c0_4 = arith.constant 0 : index
    %c0_5 = arith.constant 0 : index
    %5 = vector.load %arg4[%c0_4, %c0_5] : memref<128x128xf32, #tpu.memory_space<vmem>>, vector<128x128xf32>
    %cst = arith.constant dense<0.000000e+00> : vector<8x128xf32>
    %6 = tpu.matmul %4, %5, %cst {dimension_numbers = #tpu.dot_dimension_numbers<[1], [0], [0], [1], [0, 0, 1, 1], [], []>} : vector<8x128xf32>, vector<128x128xf32>, vector<8x128xf32> -> vector<8x128xf32>
    %7 = arith.addf %3, %6 : vector<8x128xf32>
    %c0_6 = arith.constant 0 : index
    %c0_7 = arith.constant 0 : index
    %8 = vector.load %arg10[%c0_6, %c0_7] : memref<8x128xf32, #tpu.memory_space<vmem>>, vector<8x128xf32>
    tpu.vector_store %arg10[%c0_6, %c0_7], %7 {strides = array<i32>} : memref<8x128xf32, #tpu.memory_space<vmem>>, vector<8x128xf32>,
    %c0_i32_8 = arith.constant 0 : i32
    %9 = arith.cmpi eq, %arg2, %c0_i32_8 : i32
    %10 = arith.extui %9 : i1 to i32
    %c0_i32_9 = arith.constant 0 : i32
    %11 = arith.cmpi ne, %10, %c0_i32_9 : i32
    scf.if %11 {
      %c0_10 = arith.constant 0 : index
      %c0_11 = arith.constant 0 : index
      %12 = vector.load %arg10[%c0_10, %c0_11] : memref<8x128xf32, #tpu.memory_space<vmem>>, vector<8x128xf32>
      %c0_12 = arith.constant 0 : index
      %c0_13 = arith.constant 0 : index
      %13 = vector.load %arg5[%c0_12, %c0_13] : memref<1x128xf32, #tpu.memory_space<vmem>>, vector<1x128xf32>
      %14 = vector.broadcast %13 : vector<1x128xf32> to vector<8x128xf32>
      %15 = arith.addf %12, %14 : vector<8x128xf32>
      %16 = math.absf %15 : vector<8x128xf32>
      %cst_14 = arith.constant 0.000000e+00 : f32
      %17 = vector.broadcast %cst_14 : f32 to vector<8x128xf32>
      %18 = arith.subf %17, %16 : vector<8x128xf32>
      %19 = math.exp %18 : vector<8x128xf32>
      %20 = arith.mulf %19, %19 : vector<8x128xf32>
      %cst_15 = arith.constant 0.000000e+00 : f32
      %21 = vector.broadcast %cst_15 : f32 to vector<8x128xf32>
      %22 = arith.cmpf oge, %15, %21 : vector<8x128xf32>
      %cst_16 = arith.constant 2.000000e+00 : f32
      %23 = vector.broadcast %cst_16 : f32 to vector<8x128xf32>
      %24 = arith.mulf %23, %19 : vector<8x128xf32>
      %cst_17 = arith.constant 1.000000e+00 : f32
      %25 = vector.broadcast %cst_17 : f32 to vector<8x128xf32>
      %26 = arith.addf %25, %24 : vector<8x128xf32>
      %cst_18 = arith.constant 2.000000e+00 : f32
      %27 = vector.broadcast %cst_18 : f32 to vector<8x128xf32>
      %28 = arith.mulf %27, %19 : vector<8x128xf32>
      %29 = arith.addf %28, %20 : vector<8x128xf32>
      %30 = arith.select %22, %26, %29 : vector<8x128xi1>, vector<8x128xf32>
      %cst_19 = arith.constant 2.000000e+00 : f32
      %31 = vector.broadcast %cst_19 : f32 to vector<8x128xf32>
      %32 = arith.mulf %31, %20 : vector<8x128xf32>
      %cst_20 = arith.constant 2.000000e+00 : f32
      %33 = vector.broadcast %cst_20 : f32 to vector<8x128xf32>
      %34 = arith.select %22, %32, %33 : vector<8x128xi1>, vector<8x128xf32>
      %35 = arith.addf %30, %34 : vector<8x128xf32>
      %36 = arith.divf %30, %35 : vector<8x128xf32>
      %37 = arith.mulf %15, %36 : vector<8x128xf32>
      %c0_21 = arith.constant 0 : index
      %c0_22 = arith.constant 0 : index
      %38 = vector.load %arg8[%c0_21, %c0_22] : memref<8x128xf32, #tpu.memory_space<vmem>>, vector<8x128xf32>
      tpu.vector_store %arg8[%c0_21, %c0_22], %37 {strides = array<i32>} : memref<8x128xf32, #tpu.memory_space<vmem>>, vector<8x128xf32>,
      %c0_23 = arith.constant 0 : index
      %c0_24 = arith.constant 0 : index
      %39 = vector.load %arg6[%c0_23, %c0_24] : memref<1x128xf32, #tpu.memory_space<vmem>>, vector<1x128xf32>
      %40 = vector.broadcast %39 : vector<1x128xf32> to vector<8x128xf32>
      %41 = arith.mulf %37, %40 : vector<8x128xf32>
      %c0_25 = arith.constant 0 : index
      %c0_26 = arith.constant 0 : index
      %42 = vector.load %arg7[%c0_25, %c0_26] : memref<1x128xf32, #tpu.memory_space<vmem>>, vector<1x128xf32>
      %43 = vector.broadcast %42 : vector<1x128xf32> to vector<8x128xf32>
      %44 = arith.addf %41, %43 : vector<8x128xf32>
      %c0_27 = arith.constant 0 : index
      %c0_28 = arith.constant 0 : index
      %45 = vector.load %arg9[%c0_27, %c0_28] : memref<8x128xf32, #tpu.memory_space<vmem>>, vector<8x128xf32>
      tpu.vector_store %arg9[%c0_27, %c0_28], %44 {strides = array<i32>} : memref<8x128xf32, #tpu.memory_space<vmem>>, vector<8x128xf32>,
    } else {
    }
    return
  }
  func.func @transform_0(%arg0: i32, %arg1: i32, %arg2: i32) -> (i32, i32) {
    %c0_i32 = arith.constant 0 : i32
    return %arg0, %arg2 : i32, i32
  }
  func.func @transform_1(%arg0: i32, %arg1: i32, %arg2: i32) -> (i32, i32) {
    %c0_i32 = arith.constant 0 : i32
    return %arg2, %arg1 : i32, i32
  }
  func.func @transform_2(%arg0: i32, %arg1: i32, %arg2: i32) -> (i32, i32) {
    %c0_i32 = arith.constant 0 : i32
    %c0_i32_0 = arith.constant 0 : i32
    return %c0_i32, %arg1 : i32, i32
  }
  func.func @transform_3(%arg0: i32, %arg1: i32, %arg2: i32) -> (i32, i32) {
    %c0_i32 = arith.constant 0 : i32
    %c0_i32_0 = arith.constant 0 : i32
    return %c0_i32, %arg1 : i32, i32
  }
  func.func @transform_4(%arg0: i32, %arg1: i32, %arg2: i32) -> (i32, i32) {
    %c0_i32 = arith.constant 0 : i32
    %c0_i32_0 = arith.constant 0 : i32
    return %c0_i32, %arg1 : i32, i32
  }
  func.func @transform_5(%arg0: i32, %arg1: i32, %arg2: i32) -> (i32, i32) {
    %c0_i32 = arith.constant 0 : i32
    return %arg0, %arg1 : i32, i32
  }
  func.func @transform_6(%arg0: i32, %arg1: i32, %arg2: i32) -> (i32, i32) {
    %c0_i32 = arith.constant 0 : i32
    return %arg0, %arg1 : i32, i32
  }
}

</mosaic_0001>

<bundles_post_ra>
// kernel: tpu_custom_call.1
= control target key start
LH: loop header
LB: loop body
LE: loop exit
PB: predicated region body
PF: predicated region fallthrough
CT: control target
= control target key end

     0   :  { %12 = vsyncpa [#allocation4], 0  ;;  %s440_s0 = inlined_call_operand.hbm [shape: f32[8,128], index: 0, kind: input, shape index: {}]   ;;  %s441_s1 = inlined_call_operand.hbm [shape: f32[128,128], index: 1, kind: input, shape index: {}]   ;;  %s442_s2 = inlined_call_operand.vmem [shape: f32[1,128], index: 2, kind: input, shape index: {}]   ;;  %s443_s3 = inlined_call_operand.vmem [shape: f32[1,128], index: 3, kind: input, shape index: {}]   ;;  %s444_s4 = inlined_call_operand.vmem [shape: f32[1,128], index: 4, kind: input, shape index: {}]   ;;  %s445_s5 = inlined_call_operand.hbm [shape: f32[8,128], index: 5, kind: output, shape index: {0}]   ;;  %s446_s6 = inlined_call_operand.hbm [shape: f32[8,128], index: 6, kind: output, shape index: {1}]  }
   0x1   :  { %13 = vsyncpa [#allocation7], 0 }
   0x2   :  { %14 = vsyncpa [#allocation5], 0 }
   0x3   :  { %15 = vsyncpa [#allocation10], 0  ;;  %s376_s21 = smov [#allocation3]   ;;  %s377_s23 = smov [#allocation6]  }
   0x4   :  { %s22_s22 = sshll.u32 %s376_s21, 4  ;;  %s31_s24 = sshll.u32 %s377_s23, 4  ;;  %s23_s22 = int_to_ptr.vmem [resolvable:$true] %s22_s22  ;;  %s32_s24 = int_to_ptr.vmem [resolvable:$true] %s31_s24 }
   0x5   :  { %s296_s25 = scalar_lea.vmem %s23_s22, 128  ;;  %p301_p1 = scmp.lt.s32.totalorder %s23_s22, %s23_s22 }
   0x6   :  { %p297_p0 = scmp.ne.s32.totalorder %s23_s22, %s296_s25  ;;  %p302_p2 = scmp.lt.s32.totalorder %s296_s25, %s296_s25 }
   0x8   :  { %p303_p3 = por %p302_p2, %p301_p1 }
   0xa   :  { %p304_p4 = pnand %p303_p3, %p297_p0 }
   0xc   :  { %307 = shalt.err (!%p304_p4)
}
   0xd   :  { %25 = dma.hbm_to_vmem [thread:$0]  %s440_s0, 128, %s23_s22, [#allocation4]  }
   0xe   :  { %s316_s28 = scalar_lea.vmem %s32_s24, 2048  ;;  %p321_p6 = scmp.lt.s32.totalorder %s32_s24, %s32_s24 }
   0xf   :  { %p317_p5 = scmp.ne.s32.totalorder %s32_s24, %s316_s28  ;;  %p322_p7 = scmp.lt.s32.totalorder %s316_s28, %s316_s28 }
  0x11   :  { %p323_p8 = por %p322_p7, %p321_p6 }
  0x13   :  { %p324_p9 = pnand %p323_p8, %p317_p5 }
  0x15   :  { %327 = shalt.err (!%p324_p9)
}
  0x16   :  { %s378_s29 = smov 128   ;;  %s379_s30 = smov 8  }
  0x17   :  { %37 = dma.hbm_to_vmem [thread:$0]  %s441_s1, 2048, %s32_s24, [#allocation7], %s378_s29, %s378_s29, %s379_s30  }
  0x18   :  { %368 = dma.done.wait [#allocation4], 128  }
  0x19   :  { %369 = vsyncadd [#allocation4], 4294967168 }
  0x1a   :  { %370 = dma.done.wait [#allocation7], 2048  }
  0x1b   :  { %371 = vsyncadd [#allocation7], 4294965248  ;;  %v380_v0 = vmov 0.0   ;;  %vm381_vm0 = vmmov 0   ;;  %v72_v1 = vld [vmem:[#allocation6 + $0x78] sm:$0xff]  ;;  %v71_v2 = vld [vmem:[#allocation6 + $0x70] sm:$0xff] }
  0x1c   :  { %241 = vmatprep.subr.mxu0 %v380_v0  ;;  %273 = vmatprep.mubr.msk.f32.mxu0 %vm381_vm0, %v380_v0  ;;  %v70_v3 = vld [vmem:[#allocation6 + $0x68] sm:$0xff]  ;;  %v69_v4 = vld [vmem:[#allocation6 + $0x60] sm:$0xff]  ;;  %v68_v5 = vld [vmem:[#allocation6 + $0x58] sm:$0xff]  ;;  %s383_s14 = smov [#allocation9]  }
  0x1d   :  { %242 = vmatpush3.msra.mxu0 %v72_v1  ;;  %v67_v6 = vld [vmem:[#allocation6 + $0x50] sm:$0xff]  ;;  %v66_v7 = vld [vmem:[#allocation6 + $0x48] sm:$0xff]  ;;  %v65_v8 = vld [vmem:[#allocation6 + $0x40] sm:$0xff]  ;;  %s207_s15 = sshll.u32 %s383_s14, 4  ;;  %s208_s15 = int_to_ptr.vmem [resolvable:$true] %s207_s15 }
  0x1e   :  { %243 = vmatprep.subr.mxu0 %v380_v0  ;;  %v64_v9 = vld [vmem:[#allocation6 + $0x38] sm:$0xff]  ;;  %v63_v10 = vld [vmem:[#allocation6 + $0x30] sm:$0xff]  ;;  %v62_v11 = vld [vmem:[#allocation6 + $0x28] sm:$0xff] }
  0x1f   :  { %244 = vmatpush3.msra.mxu0 %v71_v2  ;;  %v61_v12 = vld [vmem:[#allocation6 + $0x20] sm:$0xff]  ;;  %v60_v13 = vld [vmem:[#allocation6 + $0x18] sm:$0xff]  ;;  %v59_v14 = vld [vmem:[#allocation6 + $0x10] sm:$0xff] }
  0x20   :  { %245 = vmatprep.subr.mxu0 %v380_v0  ;;  %v58_v15 = vld [vmem:[#allocation6 + $0x8] sm:$0xff]  ;;  %v57_v16 = vld [vmem:[#allocation6] sm:$0xff]  ;;  %v56_v17 = vld [vmem:[#allocation3] sm:$0xff] }
  0x21   :  { %246 = vmatpush3.msra.mxu0 %v70_v3  ;;  %v221_v18 = vld [vmem:[%s442_s2] ss:$0 sm:$0xff]  ;;  %s382_s2 = smov [#allocation8]  }
  0x22   :  { %247 = vmatprep.subr.mxu0 %v380_v0  ;;  %s197_s9 = sshll.u32 %s382_s2, 4  ;;  %v222_v36 = vld [vmem:[%s443_s3] ss:$0 sm:$0xff]  ;;  %s198_s9 = int_to_ptr.vmem [resolvable:$true] %s197_s9 }
  0x23   :  { %248 = vmatpush3.msra.mxu0 %v69_v4  ;;  %v223_v38 = vld [vmem:[%s444_s4] ss:$0 sm:$0xff]  ;;  %s328_s16 = scalar_lea.vmem %s198_s9, 128  ;;  %p333_p11 = scmp.lt.s32.totalorder %s198_s9, %s198_s9 }
  0x24   :  { %249 = vmatprep.subr.mxu0 %v380_v0  ;;  %p329_p10 = scmp.ne.s32.totalorder %s198_s9, %s328_s16  ;;  %p334_p12 = scmp.lt.s32.totalorder %s328_s16, %s328_s16 }
  0x25   :  { %250 = vmatpush3.msra.mxu0 %v68_v5 }
  0x26   :  { %251 = vmatprep.subr.mxu0 %v380_v0  ;;  %p335_p13 = por %p334_p12, %p333_p11 }
  0x27   :  { %252 = vmatpush3.msra.mxu0 %v67_v6 }
  0x28   :  { %253 = vmatprep.subr.mxu0 %v380_v0  ;;  %p336_p0 = pnand %p335_p13, %p329_p10 }
  0x29   :  { %254 = vmatpush3.msra.mxu0 %v66_v7 }
  0x2a   :  { %255 = vmatprep.subr.mxu0 %v380_v0 }
  0x2b   :  { %256 = vmatpush3.msra.mxu0 %v65_v8 }
  0x2c   :  { %257 = vmatprep.subr.mxu0 %v380_v0 }
  0x2d   :  { %258 = vmatpush3.msra.mxu0 %v64_v9 }
  0x2e   :  { %259 = vmatprep.subr.mxu0 %v380_v0 }
  0x2f   :  { %260 = vmatpush3.msra.mxu0 %v63_v10 }
  0x30   :  { %261 = vmatprep.subr.mxu0 %v380_v0 }
  0x31   :  { %262 = vmatpush3.msra.mxu0 %v62_v11 }
  0x32   :  { %263 = vmatprep.subr.mxu0 %v380_v0 }
  0x33   :  { %264 = vmatpush3.msra.mxu0 %v61_v12 }
  0x34   :  { %265 = vmatprep.subr.mxu0 %v380_v0 }
  0x35   :  { %266 = vmatpush3.msra.mxu0 %v60_v13 }
  0x36   :  { %267 = vmatprep.subr.mxu0 %v380_v0 }
  0x37   :  { %268 = vmatpush3.msra.mxu0 %v59_v14 }
  0x38   :  { %269 = vmatprep.subr.mxu0 %v380_v0 }
  0x39   :  { %270 = vmatpush3.msra.mxu0 %v58_v15 }
  0x3a   :  { %271 = vmatprep.subr.mxu0 %v380_v0 }
  0x3b   :  { %272 = vmatpush3.msra.mxu0 %v57_v16 }
  0x3c   :  { %274 = vmatmul.mubr.f32.vlgmr.msra.gmra.mxu0 %v56_v17 }
  0xfc   :  { %v139_v19 = vpop.f32.mrf.mxu0 }
  0xfd   :  { %v156_v20 = vadd.f32 %v221_v18, %v139_v19 }
  0xfe   :  { %v275_v21 = vpop.f32.mrf.mxu0 }
  0xff   :  { %v157_v22 = vand.u32 2147483647, %v156_v20  ;;  %vm162_vm1 = vcmp.ge.f32.partialorder %v156_v20, 0.0 }
 0x101   :  { %v158_v23 = vsub.f32 0.0, %v157_v22 }
 0x103   :  { %v159_v24 = vmul.f32 1.442695, %v158_v23 }
 0x105   :  { %284 = vpow2.f32 %v159_v24 }
 0x112   :  { %v285_v25 = vpop.eup %284 }
 0x113   :  { %v161_v26 = vmul.f32 %v285_v25, %v285_v25  ;;  %v163_v27 = vmul.f32 2.0, %v285_v25 }
 0x115   :  { %v167_v28 = vmul.f32 2.0, %v161_v26  ;;  %v164_v29 = vadd.f32 1.0, %v163_v27  ;;  %v165_v30 = vadd.f32 %v163_v27, %v161_v26 }
 0x117   :  { %v168_v31 = vsel %vm162_vm1, %v167_v28, 2.0  ;;  %v166_v32 = vsel %vm162_vm1, %v164_v29, %v165_v30 }
 0x118   :  { %v169_v33 = vadd.f32 %v168_v31, %v166_v32 }
 0x11a   :  { %286 = vrcp.f32 %v169_v33 }
 0x127   :  { %v287_v34 = vpop.eup %286 }
 0x128   :  { %v171_v35 = vmul.f32 %v287_v34, %v166_v32 }
 0x12a   :  { %v172_v37 = vmul.f32 %v171_v35, %v156_v20 }
 0x12c   :  { %173 = vst [vmem:[#allocation8] sm:$0xff] %v172_v37  ;;  %v181_v39 = vmul.f32 %v222_v36, %v172_v37 }
 0x12d   :  { %339 = shalt.err (!%p336_p0)
}
 0x12e   :  { %200 = dma.vmem_to_hbm [thread:$0]  %s198_s9, 128, %s445_s5, [#allocation5]   ;;  %v189_v40 = vadd.f32 %v223_v38, %v181_v39 }
 0x12f   :  { %s348_s3 = scalar_lea.vmem %s208_s15, 128  ;;  %p353_p2 = scmp.lt.s32.totalorder %s208_s15, %s208_s15 }
 0x130   :  { %190 = vst [vmem:[#allocation9] sm:$0xff] %v189_v40  ;;  %p349_p1 = scmp.ne.s32.totalorder %s208_s15, %s348_s3  ;;  %p354_p3 = scmp.lt.s32.totalorder %s348_s3, %s348_s3 }
 0x132   :  { %p355_p4 = por %p354_p3, %p353_p2 }
 0x134   :  { %p356_p5 = pnand %p355_p4, %p349_p1 }
 0x136   :  { %359 = shalt.err (!%p356_p5)
}
 0x137   :  { %210 = dma.vmem_to_hbm [thread:$0]  %s208_s15, 128, %s446_s6, [#allocation10]  }
 0x138   :  { %372 = dma.done.wait [#allocation5], 128  }
 0x139   :  { %373 = vsyncadd [#allocation5], 4294967168 }
 0x13a   :  { %374 = dma.done.wait [#allocation10], 128  }
 0x13b   :  { %375 = vsyncadd [#allocation10], 4294967168 }
 0x13c   :  { %217 = vsyncpa [#allocation4], 1 }
 0x13d   :  { %218 = vsyncpa [#allocation7], 1 }
 0x13e   :  { %219 = vsyncpa [#allocation5], 1 }
 0x13f   :  { %220 = vsyncpa [#allocation10], 1 }

</bundles_post_ra>
